<compile_context>
chip_gen: v5e
topology: v5e:2x2
jax: 0.10.0
libtpu: 0.0.40
codegen_flags: <defaults>
</compile_context>

<pallas_src>
import jax
import jax.numpy as jnp
from jax.experimental import pallas as pl
from jax.experimental.pallas import tpu as pltpu

BN_EPS = 1e-5


def ca_kernel(x_ref, w1_ref, b1_ref, wh_ref, bh_ref, ww_ref, bw_ref, out_ref):
    # x: (Nb, C, H, W) NCHW block; W on lanes, H on sublanes.
    x = x_ref[...]
    Nb, C, H, W = x.shape

    # --- coordinate pooling (AdaptiveAvgPool2d((H,1)) / ((1,W))), f32 accumulation ---
    # Results are tiny: (Nb, C, H) and (Nb, C, W).
    x_h = jnp.sum(x, axis=3, dtype=jnp.float32) * (1.0 / W)   # mean over W (lane reduce)
    x_w = jnp.sum(x, axis=2, dtype=jnp.float32) * (1.0 / H)   # mean over H (sublane reduce)

    w1 = w1_ref[...]          # (mip, C)   conv1 weight with BN folded in
    b1 = b1_ref[...]          # (mip, 1)   conv1 bias with BN folded in
    wh = wh_ref[...]          # (oup, mip)
    bh = bh_ref[...]          # (oup, 1)
    ww = ww_ref[...]          # (oup, mip)
    bw = bw_ref[...]          # (oup, 1)
    oup = wh.shape[0]

    def attn(pooled, w2, b2):
        # pooled: (C, S). 1x1 conv (+folded BN) -> h_swish -> 1x1 conv -> sigmoid.
        z = jnp.dot(w1, pooled, preferred_element_type=jnp.float32) + b1     # (mip, S)
        z = z * jnp.clip(z + 3.0, 0.0, 6.0) * (1.0 / 6.0)                    # h_swish
        a = jnp.dot(w2, z, preferred_element_type=jnp.float32) + b2          # (oup, S)
        return jax.nn.sigmoid(a)

    # Unrolled over the (small) per-block batch; keeps everything as plain 2D
    # MXU matmuls and needs no transposes of the full block.
    ah_list = []
    aw_list = []
    for n in range(Nb):
        ah_list.append(attn(x_h[n], wh, bh))   # (oup, H)
        aw_list.append(attn(x_w[n], ww, bw))   # (oup, W)
    ah = jnp.stack(ah_list, axis=0).reshape(Nb, oup, H, 1).astype(x.dtype)   # bcast over W
    aw = jnp.stack(aw_list, axis=0).reshape(Nb, oup, 1, W).astype(x.dtype)   # bcast over H

    # --- out = identity * a_w * a_h, in the native dtype (single fused epilogue) ---
    out_ref[...] = (x * ah * aw).astype(out_ref.dtype)


def _vmem_capacity_bytes():
    try:
        info = pltpu.get_tpu_info()
        cap = getattr(info, "vmem_capacity_bytes", None)
        if cap:
            return int(cap)
    except Exception:
        pass
    return 64 << 20   # conservative fallback (v7x per-TensorCore VMEM)


def _pick_block_batch(n, per_image_native, per_image_f32, vmem_limit):
    # Per grid step footprint: ~2x double-buffered input blocks + 2x output
    # blocks (native dtype) + ~2 block-sized f32-ish temporaries in the body.
    per_image_cost = 4 * per_image_native + 2 * per_image_f32
    nb_vmem = max(1, int(0.8 * vmem_limit) // max(per_image_cost, 1))
    # Keep >= min(n, 4) pipeline steps so DMA/compute/writeback overlap and the
    # grid is even (v7x megacore) whenever n >= 2.
    nb_grid = max(1, n // min(n, 4))
    nb = max(1, min(n, nb_vmem, nb_grid))
    while n % nb:
        nb -= 1
    return nb


def ca_forward(x, params, *, block_batch=None, interpret=False):
    N, C, H, W = x.shape
    mip = params["w1"].shape[0]
    oup = params["wh"].shape[0]
    assert oup == C, "CA broadcast multiply requires oup == inp"

    # --- fold eval-mode BN into conv1 (wrapper-side, numerically identical) ---
    scale = params["gamma"] * jax.lax.rsqrt(params["var"] + BN_EPS)          # (mip, 1)
    w1f = (params["w1"] * scale).astype(jnp.float32)                         # (mip, C)
    b1f = scale * (params["b1"] - params["mean"]) + params["beta"]           # (mip, 1)
    wh, bh = params["wh"], params["bh"]                                      # (oup, mip), (oup, 1)
    ww, bw = params["ww"], params["bw"]

    # --- generation-aware VMEM sizing ---
    per_image_native = C * H * W * x.dtype.itemsize
    per_image_f32 = C * H * W * 4
    vmem_cap = _vmem_capacity_bytes()
    vmem_limit = min(int(0.70 * vmem_cap), 96 << 20)    # ~45 MiB on v7x, ~90 MiB on v5e/v6e

    nb = block_batch if block_batch is not None else _pick_block_batch(
        N, per_image_native, per_image_f32, vmem_limit)
    assert N % nb == 0

    img_spec = pl.BlockSpec((nb, C, H, W), lambda n: (n, 0, 0, 0))

    def full_spec(a):
        return pl.BlockSpec(a.shape, lambda n, _nd=a.ndim: (0,) * _nd)

    flops = (2 * N * (H + W) * C * mip          # conv1
             + 2 * N * (H + W) * mip * oup      # conv_h / conv_w
             + 3 * N * H * W * C)               # pooling + element-wise apply
    cost = pl.CostEstimate(
        flops=flops,
        transcendentals=N * (H + W) * oup,                       # sigmoids
        bytes_accessed=2 * N * H * W * C * x.dtype.itemsize,     # read + write of x
    )

    return pl.pallas_call(
        ca_kernel,
        out_shape=jax.ShapeDtypeStruct((N, C, H, W), x.dtype),
        grid=(N // nb,),
        in_specs=[
            img_spec,
            full_spec(w1f), full_spec(b1f),
            full_spec(wh), full_spec(bh),
            full_spec(ww), full_spec(bw),
        ],
        out_specs=img_spec,
        compiler_params=pltpu.CompilerParams(
            dimension_semantics=("parallel",),
            vmem_limit_bytes=vmem_limit,
        ),
        cost_estimate=cost,
        interpret=interpret,
    )(x, w1f, b1f, wh, bh, ww, bw)


def ca_reference(x, p):
    """Pure-JAX reference mirroring the PyTorch forward (NCHW)."""
    N, C, H, W = x.shape
    x_h = x.mean(axis=3)                              # (N, C, H)
    x_w = x.mean(axis=2)                              # (N, C, W)
    y = jnp.concatenate([x_h, x_w], axis=2)           # (N, C, H+W)
    z = jnp.einsum("mc,ncs->nms", p["w1"], y) + p["b1"][None]
    z = (z - p["mean"][None]) * jax.lax.rsqrt(p["var"][None] + BN_EPS) \
        * p["gamma"][None] + p["beta"][None]
    z = z * jnp.clip(z + 3.0, 0.0, 6.0) / 6.0
    zh, zw = z[:, :, :H], z[:, :, H:]
    ah = jax.nn.sigmoid(jnp.einsum("om,nms->nos", p["wh"], zh) + p["bh"][None])
    aw = jax.nn.sigmoid(jnp.einsum("om,nms->nos", p["ww"], zw) + p["bw"][None])
    return x * ah[:, :, :, None] * aw[:, :, None, :]


def init_params(key, inp, oup, reduction=32):
    mip = max(8, inp // reduction)
    ks = jax.random.split(key, 8)
    return {
        "w1":    0.1 * jax.random.normal(ks[0], (mip, inp), jnp.float32),
        "b1":    0.1 * jax.random.normal(ks[1], (mip, 1), jnp.float32),
        "gamma": 1.0 + 0.05 * jax.random.normal(ks[2], (mip, 1), jnp.float32),
        "beta":  0.05 * jax.random.normal(ks[3], (mip, 1), jnp.float32),
        "mean":  0.05 * jax.random.normal(ks[4], (mip, 1), jnp.float32),
        "var":   1.0 + 0.1 * jax.random.uniform(ks[5], (mip, 1), jnp.float32),
        "wh":    0.1 * jax.random.normal(ks[6], (oup, mip), jnp.float32),
        "bh":    jnp.zeros((oup, 1), jnp.float32),
        "ww":    0.1 * jax.random.normal(ks[7], (oup, mip), jnp.float32),
        "bw":    jnp.zeros((oup, 1), jnp.float32),
    }


if __name__ == "__main__":
    key = jax.random.PRNGKey(0)
    k_x, k_p = jax.random.split(key)

    N, C, H, W = 2, 4, 16, 16           # inp = oup = 4 (broadcast requires oup == inp)
    x = jax.random.normal(k_x, (N, C, H, W), jnp.float32)
    params = init_params(k_p, inp=C, oup=C, reduction=32)

    out = jax.block_until_ready(ca_forward(x, params))

    ref = ca_reference(x, params)
    assert out.shape == (N, C, H, W)
    assert jnp.allclose(out, ref, atol=1e-5, rtol=1e-5), "Pallas output mismatch vs reference"

    print("KERNEL_OK")
</pallas_src>

<mosaic_0001>
module attributes {stable_mosaic.version = 11 : i64} {
  func.func @ca_kernel(%arg0: i32, %arg1: memref<1x4x16x16xf32, #tpu.memory_space<vmem>>, %arg2: memref<8x4xf32, #tpu.memory_space<vmem>>, %arg3: memref<8x1xf32, #tpu.memory_space<vmem>>, %arg4: memref<4x8xf32, #tpu.memory_space<vmem>>, %arg5: memref<4x1xf32, #tpu.memory_space<vmem>>, %arg6: memref<4x8xf32, #tpu.memory_space<vmem>>, %arg7: memref<4x1xf32, #tpu.memory_space<vmem>>, %arg8: memref<1x4x16x16xf32, #tpu.memory_space<vmem>>) attributes {dimension_semantics = [#tpu.dimension_semantics<parallel>], iteration_bounds = array<i64: 2>, scalar_prefetch = 0 : i64, scratch_operands = 0 : i64, tpu.core_type = #tpu.core_type<tc>, window_params = [{transform_indices = @transform_0, window_bounds = array<i64: 1, 4, 16, 16>}, {pipeline_mode = #tpu.pipeline_mode<synchronous>, transform_indices = @transform_1, window_bounds = array<i64: 8, 4>}, {pipeline_mode = #tpu.pipeline_mode<synchronous>, transform_indices = @transform_2, window_bounds = array<i64: 8, 1>}, {pipeline_mode = #tpu.pipeline_mode<synchronous>, transform_indices = @transform_3, window_bounds = array<i64: 4, 8>}, {pipeline_mode = #tpu.pipeline_mode<synchronous>, transform_indices = @transform_4, window_bounds = array<i64: 4, 1>}, {pipeline_mode = #tpu.pipeline_mode<synchronous>, transform_indices = @transform_5, window_bounds = array<i64: 4, 8>}, {pipeline_mode = #tpu.pipeline_mode<synchronous>, transform_indices = @transform_6, window_bounds = array<i64: 4, 1>}, {transform_indices = @transform_7, window_bounds = array<i64: 1, 4, 16, 16>}]} {
    %c0 = arith.constant 0 : index
    %c0_0 = arith.constant 0 : index
    %c0_1 = arith.constant 0 : index
    %c0_2 = arith.constant 0 : index
    %0 = vector.load %arg1[%c0, %c0_0, %c0_1, %c0_2] : memref<1x4x16x16xf32, #tpu.memory_space<vmem>>, vector<1x4x16x16xf32>
    %cst = arith.constant dense<0.000000e+00> : vector<1x4x16xf32>
    %1 = vector.multi_reduction <add>, %0, %cst [3] : vector<1x4x16x16xf32> to vector<1x4x16xf32>
    %cst_3 = arith.constant 6.250000e-02 : f32
    %2 = vector.broadcast %cst_3 : f32 to vector<1x4x16xf32>
    %3 = arith.mulf %1, %2 : vector<1x4x16xf32>
    %cst_4 = arith.constant dense<0.000000e+00> : vector<1x4x16xf32>
    %4 = vector.multi_reduction <add>, %0, %cst_4 [2] : vector<1x4x16x16xf32> to vector<1x4x16xf32>
    %cst_5 = arith.constant 6.250000e-02 : f32
    %5 = vector.broadcast %cst_5 : f32 to vector<1x4x16xf32>
    %6 = arith.mulf %4, %5 : vector<1x4x16xf32>
    %c0_6 = arith.constant 0 : index
    %c0_7 = arith.constant 0 : index
    %7 = vector.load %arg2[%c0_6, %c0_7] : memref<8x4xf32, #tpu.memory_space<vmem>>, vector<8x4xf32>
    %c0_8 = arith.constant 0 : index
    %c0_9 = arith.constant 0 : index
    %8 = vector.load %arg3[%c0_8, %c0_9] : memref<8x1xf32, #tpu.memory_space<vmem>>, vector<8x1xf32>
    %c0_10 = arith.constant 0 : index
    %c0_11 = arith.constant 0 : index
    %9 = vector.load %arg4[%c0_10, %c0_11] : memref<4x8xf32, #tpu.memory_space<vmem>>, vector<4x8xf32>
    %c0_12 = arith.constant 0 : index
    %c0_13 = arith.constant 0 : index
    %10 = vector.load %arg5[%c0_12, %c0_13] : memref<4x1xf32, #tpu.memory_space<vmem>>, vector<4x1xf32>
    %c0_14 = arith.constant 0 : index
    %c0_15 = arith.constant 0 : index
    %11 = vector.load %arg6[%c0_14, %c0_15] : memref<4x8xf32, #tpu.memory_space<vmem>>, vector<4x8xf32>
    %c0_16 = arith.constant 0 : index
    %c0_17 = arith.constant 0 : index
    %12 = vector.load %arg7[%c0_16, %c0_17] : memref<4x1xf32, #tpu.memory_space<vmem>>, vector<4x1xf32>
    %13 = vector.shape_cast %3 : vector<1x4x16xf32> to vector<4x16xf32>
    %cst_18 = arith.constant dense<0.000000e+00> : vector<8x16xf32>
    %14 = tpu.matmul %7, %13, %cst_18 {dimension_numbers = #tpu.dot_dimension_numbers<[1], [0], [0], [1], [0, 0, 1, 1], [], []>} : vector<8x4xf32>, vector<4x16xf32>, vector<8x16xf32> -> vector<8x16xf32>
    %15 = vector.broadcast %8 : vector<8x1xf32> to vector<8x16xf32>
    %16 = arith.addf %14, %15 : vector<8x16xf32>
    %cst_19 = arith.constant 3.000000e+00 : f32
    %17 = vector.broadcast %cst_19 : f32 to vector<8x16xf32>
    %18 = arith.addf %16, %17 : vector<8x16xf32>
    %cst_20 = arith.constant 0.000000e+00 : f32
    %cst_21 = arith.constant 6.000000e+00 : f32
    %19 = vector.broadcast %cst_20 : f32 to vector<8x16xf32>
    %20 = arith.maximumf %19, %18 : vector<8x16xf32>
    %21 = vector.broadcast %cst_21 : f32 to vector<8x16xf32>
    %22 = arith.minimumf %21, %20 : vector<8x16xf32>
    %23 = arith.mulf %16, %22 : vector<8x16xf32>
    %cst_22 = arith.constant 0.166666672 : f32
    %24 = vector.broadcast %cst_22 : f32 to vector<8x16xf32>
    %25 = arith.mulf %23, %24 : vector<8x16xf32>
    %cst_23 = arith.constant dense<0.000000e+00> : vector<4x16xf32>
    %26 = tpu.matmul %9, %25, %cst_23 {dimension_numbers = #tpu.dot_dimension_numbers<[1], [0], [0], [1], [0, 0, 1, 1], [], []>} : vector<4x8xf32>, vector<8x16xf32>, vector<4x16xf32> -> vector<4x16xf32>
    %27 = vector.broadcast %10 : vector<4x1xf32> to vector<4x16xf32>
    %28 = arith.addf %26, %27 : vector<4x16xf32>
    %29 = arith.negf %28 : vector<4x16xf32>
    %30 = math.exp %29 : vector<4x16xf32>
    %cst_24 = arith.constant 1.000000e+00 : f32
    %31 = vector.broadcast %cst_24 : f32 to vector<4x16xf32>
    %32 = arith.addf %31, %30 : vector<4x16xf32>
    %33 = arith.divf %31, %32 : vector<4x16xf32>
    %34 = vector.shape_cast %6 : vector<1x4x16xf32> to vector<4x16xf32>
    %cst_25 = arith.constant dense<0.000000e+00> : vector<8x16xf32>
    %35 = tpu.matmul %7, %34, %cst_25 {dimension_numbers = #tpu.dot_dimension_numbers<[1], [0], [0], [1], [0, 0, 1, 1], [], []>} : vector<8x4xf32>, vector<4x16xf32>, vector<8x16xf32> -> vector<8x16xf32>
    %36 = vector.broadcast %8 : vector<8x1xf32> to vector<8x16xf32>
    %37 = arith.addf %35, %36 : vector<8x16xf32>
    %cst_26 = arith.constant 3.000000e+00 : f32
    %38 = vector.broadcast %cst_26 : f32 to vector<8x16xf32>
    %39 = arith.addf %37, %38 : vector<8x16xf32>
    %cst_27 = arith.constant 0.000000e+00 : f32
    %cst_28 = arith.constant 6.000000e+00 : f32
    %40 = vector.broadcast %cst_27 : f32 to vector<8x16xf32>
    %41 = arith.maximumf %40, %39 : vector<8x16xf32>
    %42 = vector.broadcast %cst_28 : f32 to vector<8x16xf32>
    %43 = arith.minimumf %42, %41 : vector<8x16xf32>
    %44 = arith.mulf %37, %43 : vector<8x16xf32>
    %cst_29 = arith.constant 0.166666672 : f32
    %45 = vector.broadcast %cst_29 : f32 to vector<8x16xf32>
    %46 = arith.mulf %44, %45 : vector<8x16xf32>
    %cst_30 = arith.constant dense<0.000000e+00> : vector<4x16xf32>
    %47 = tpu.matmul %11, %46, %cst_30 {dimension_numbers = #tpu.dot_dimension_numbers<[1], [0], [0], [1], [0, 0, 1, 1], [], []>} : vector<4x8xf32>, vector<8x16xf32>, vector<4x16xf32> -> vector<4x16xf32>
    %48 = vector.broadcast %12 : vector<4x1xf32> to vector<4x16xf32>
    %49 = arith.addf %47, %48 : vector<4x16xf32>
    %50 = arith.negf %49 : vector<4x16xf32>
    %51 = math.exp %50 : vector<4x16xf32>
    %cst_31 = arith.constant 1.000000e+00 : f32
    %52 = vector.broadcast %cst_31 : f32 to vector<4x16xf32>
    %53 = arith.addf %52, %51 : vector<4x16xf32>
    %54 = arith.divf %52, %53 : vector<4x16xf32>
    %55 = vector.shape_cast %33 : vector<4x16xf32> to vector<1x4x16xf32>
    %56 = vector.shape_cast %55 : vector<1x4x16xf32> to vector<1x4x16x1xf32>
    %57 = vector.shape_cast %54 : vector<4x16xf32> to vector<1x4x16xf32>
    %58 = vector.shape_cast %57 : vector<1x4x16xf32> to vector<1x4x1x16xf32>
    %59 = vector.broadcast %56 : vector<1x4x16x1xf32> to vector<1x4x16x16xf32>
    %60 = arith.mulf %0, %59 : vector<1x4x16x16xf32>
    %61 = vector.broadcast %58 : vector<1x4x1x16xf32> to vector<1x4x16x16xf32>
    %62 = arith.mulf %60, %61 : vector<1x4x16x16xf32>
    %c0_32 = arith.constant 0 : index
    %c0_33 = arith.constant 0 : index
    %c0_34 = arith.constant 0 : index
    %c0_35 = arith.constant 0 : index
    %63 = vector.load %arg8[%c0_32, %c0_33, %c0_34, %c0_35] : memref<1x4x16x16xf32, #tpu.memory_space<vmem>>, vector<1x4x16x16xf32>
    tpu.vector_store %arg8[%c0_32, %c0_33, %c0_34, %c0_35], %62 {strides = array<i32>} : memref<1x4x16x16xf32, #tpu.memory_space<vmem>>, vector<1x4x16x16xf32>,
    return
  }
  func.func @transform_0(%arg0: i32) -> (i32, i32, i32, i32) {
    %c0_i32 = arith.constant 0 : i32
    %c0_i32_0 = arith.constant 0 : i32
    %c0_i32_1 = arith.constant 0 : i32
    %c0_i32_2 = arith.constant 0 : i32
    return %arg0, %c0_i32, %c0_i32_0, %c0_i32_1 : i32, i32, i32, i32
  }
  func.func @transform_1(%arg0: i32) -> (i32, i32) {
    %c0_i32 = arith.constant 0 : i32
    %c0_i32_0 = arith.constant 0 : i32
    %c0_i32_1 = arith.constant 0 : i32
    return %c0_i32, %c0_i32_0 : i32, i32
  }
  func.func @transform_2(%arg0: i32) -> (i32, i32) {
    %c0_i32 = arith.constant 0 : i32
    %c0_i32_0 = arith.constant 0 : i32
    %c0_i32_1 = arith.constant 0 : i32
    return %c0_i32, %c0_i32_0 : i32, i32
  }
  func.func @transform_3(%arg0: i32) -> (i32, i32) {
    %c0_i32 = arith.constant 0 : i32
    %c0_i32_0 = arith.constant 0 : i32
    %c0_i32_1 = arith.constant 0 : i32
    return %c0_i32, %c0_i32_0 : i32, i32
  }
  func.func @transform_4(%arg0: i32) -> (i32, i32) {
    %c0_i32 = arith.constant 0 : i32
    %c0_i32_0 = arith.constant 0 : i32
    %c0_i32_1 = arith.constant 0 : i32
    return %c0_i32, %c0_i32_0 : i32, i32
  }
  func.func @transform_5(%arg0: i32) -> (i32, i32) {
    %c0_i32 = arith.constant 0 : i32
    %c0_i32_0 = arith.constant 0 : i32
    %c0_i32_1 = arith.constant 0 : i32
    return %c0_i32, %c0_i32_0 : i32, i32
  }
  func.func @transform_6(%arg0: i32) -> (i32, i32) {
    %c0_i32 = arith.constant 0 : i32
    %c0_i32_0 = arith.constant 0 : i32
    %c0_i32_1 = arith.constant 0 : i32
    return %c0_i32, %c0_i32_0 : i32, i32
  }
  func.func @transform_7(%arg0: i32) -> (i32, i32, i32, i32) {
    %c0_i32 = arith.constant 0 : i32
    %c0_i32_0 = arith.constant 0 : i32
    %c0_i32_1 = arith.constant 0 : i32
    %c0_i32_2 = arith.constant 0 : i32
    return %arg0, %c0_i32, %c0_i32_0, %c0_i32_1 : i32, i32, i32, i32
  }
}

</mosaic_0001>

<bundles_post_ra>
// kernel: tpu_custom_call.1
= control target key start
LH: loop header
LB: loop body
LE: loop exit
PB: predicated region body
PF: predicated region fallthrough
CT: control target
= control target key end

     0   :  { %12 = vsyncpa [#allocation3], 0  ;;  %s1206_s0 = inlined_call_operand.hbm [shape: f32[2,4,16,16], index: 0, kind: input, shape index: {}]   ;;  %s1207_s1 = inlined_call_operand.vmem [shape: f32[8,4], index: 1, kind: input, shape index: {}]   ;;  %s1208_s2 = inlined_call_operand.vmem [shape: f32[8,1], index: 2, kind: input, shape index: {}]   ;;  %s1209_s3 = inlined_call_operand.vmem [shape: f32[4,8], index: 3, kind: input, shape index: {}]   ;;  %s1210_s4 = inlined_call_operand.vmem [shape: f32[4,1], index: 4, kind: input, shape index: {}]   ;;  %s1211_s5 = inlined_call_operand.vmem [shape: f32[4,8], index: 5, kind: input, shape index: {}]   ;;  %s1212_s6 = inlined_call_operand.vmem [shape: f32[4,1], index: 6, kind: input, shape index: {}]   ;;  %s1213_s7 = inlined_call_operand.hbm [shape: f32[2,4,16,16], index: 7, kind: output, shape index: {}]  }
   0x1   :  { %14 = vsyncpa [#allocation3 + $0x1], 0 }
   0x2   :  { %15 = vsyncpa [#allocation4], 0 }
   0x3   :  { %17 = vsyncpa [#allocation4 + $0x1], 0  ;;  %s986_s24 = smov 0   ;;  %s988_s25 = smov 0  }
   0x4   :  { %s990_s26 = smov 0   ;;  %s992_s27 = smov 0  }
   0x5 LB: > { %s1007_s28 = sadd.s32 4294967295, %s939_s27   ;;  %s751_s29 = sadd.s32 4294967294, %s939_s27   ;;  %s939_s27 = sphi %s992_s27, %s1225_s27   ;;  %s935_s26 = sphi %s990_s26, %s1224_s26   ;;  %s931_s25 = sphi %s988_s25, %s1223_s25   ;;  %s927_s24 = sphi %s986_s24, %s1222_s24  }
   0x6   : > { %s1011_s30 = sadd.s32 1, %s939_s27   ;;  %s30_s8 = sadd.s32 1, %s935_s26 }
   0x7   : > { %s27_s9 = ssub.s32 %s939_s27, %s1011_s30  ;;  %p37_p0 = scmp.ne.s32.totalorder %s935_s26, %s931_s25 }
   0x8   : > { %p28_p1 = scmp.eq.s32.totalorder %s27_s9, 0  ;;  %p38_p2 = scmp.eq.s32.totalorder %s939_s27, 0 }
   0x9   : > { %p43_p3 = scmp.ne.s32.totalorder %s931_s25, %s927_s24  ;;  %p44_p4 = scmp.eq.s32.totalorder %s1007_s28, 0 }
   0xa   : > { %s1023_s10 = scalar_select %p28_p1, %s935_s26, %s30_s8  }
   0xb   : > { %p1025_p5 = por %p38_p2, %p37_p0  ;;  %p1029_p6 = por %p44_p4, %p43_p3 }
   0xc   : > { %1214 = sst [smem:[#allocation8_spill]] %s1023_s10  ;;  %p193_p7 = scmp.eq.s32.totalorder %s1007_s28, 1 }
   0xd   : > { %p199_p8 = scmp.eq.s32.totalorder %s751_s29, 1  ;;  %p787_p10 = scmp.lt.s32.totalorder %s939_s27, 2 }
   0xe   : > { %p1036_p11 = por %p193_p7, %p37_p0  ;;  %s237_s15 = sand.u32 1, %s935_s26  }
   0xf   : > { %p1040_p12 = por %p199_p8, %p43_p3  ;;  %s773_s16 = sshll.u32 %s939_s27, 6 }
  0x10   : > { %s754_s17 = sshll.u32 %s237_s15, 6  ;;  %s246_s20 = scalar_lea.hbm %s1206_s0, %s773_s16 }
  0x11   : > { %s247_s21 = sshll.u32 %s246_s20, 4  ;;  %s241_s22 = scalar_lea.vmem [#allocation2], %s754_s17  ;;  %s248_s21 = int_to_ptr.hbm [resolvable:$true] %s247_s21 }
  0x12   : > { %s249_s23 = sshll.u32 %s241_s22, 4  ;;  %p1051_p13 = pnand %p787_p10, %p1025_p5  ;;  %s250_s23 = int_to_ptr.vmem [resolvable:$true] %s249_s23 }
  0x13   : > { %p757_p0 = scmp.ge.s32.totalorder %s939_s27, 1  ;;  %p257_p1 = scmp.lt.s32.totalorder %s939_s27, 3 }
  0x14   : > { %s238_s8 = scalar_lea.sflag [#allocation3], %s237_s15  ;;  %s843_s9 = sshra.s32 %s248_s21, 4  ;;  %s844_s9 = int_to_ptr.hbm [resolvable:$true] %s843_s9 }
  0x15   : > { %s845_s10 = scalar_lea.hbm %s844_s9, 64  ;;  %p847_p3 = pneg %p1051_p13 }
  0x16   : > { %p846_p2 = scmp.ne.s32.totalorder %s844_s9, %s845_s10  ;;  %s850_s11 = scalar_lea.hbm %s1206_s0, 128 }
  0x17   : > { %p851_p5 = scmp.lt.s32.totalorder %s844_s9, %s1206_s0  ;;  %p852_p8 = scmp.lt.s32.totalorder %s850_s11, %s845_s10 }
  0x18   : > { %p848_p4 = pnand %p847_p3, %p846_p2 }
  0x19   : > { %p853_p10 = por %p852_p8, %p851_p5 }
  0x1a   : > { %p849_p7 = pneg %p848_p4 }
  0x1c   : > { %p854_p9 = pnand %p853_p10, %p849_p7 }
  0x1e   : > { %857 = shalt.err (!%p854_p9)
}
  0x1f   : > { %s941_s15 = smov 128   ;;  %s942_s20 = smov 8  }
  0x20   : > { %782 = dma.hbm_to_vmem [thread:$0]  (!%p1051_p13), %s248_s21, 1024, %s250_s23, %s238_s8, %s941_s15, %s941_s15, %s942_s20  }
  0x21   : > { %p258_p2 = pnand %p757_p0, %p257_p1 }
  0x22   : > { %s1072_s22 = sand.u32 (!%p258_p2), 1, %s931_s25  }
  0x23   : > { %261 = sbr.rel (%p258_p2) target bundleno = 627 (0x273), region = 48  ;;  %s758_s10 = sshll.u32 (!%p258_p2), %s1072_s22, 6 }
  0x24   : > { %s264_s9 = scalar_lea.sflag (!%p258_p2), [#allocation3], %s1072_s22  ;;  %s267_s16 = scalar_lea.vmem (!%p258_p2), [#allocation2], %s758_s10 }
  0x28   : > { %918 = dma.done.wait (%p1029_p6), %s264_s9, 1024  }
  0x29   : > { %920 = vsyncadd (%p1029_p6), %s264_s9, 4294966272  ;;  %vm307_vm0 = vcmask 130048   ;;  %v1082_v0 = vld [vmem:[%s267_s16 + $0x20] sm:$0xff]  ;;  %v1084_v1 = vld [vmem:[%s267_s16 + $0x10] sm:$0xff]  ;;  %vm407_vm1 = vcmask 1041409   ;;  %vm409_vm2 = vcmask 1042434   ;;  %v391_v57 = vlaneseq }
  0x2a   : > { %v1086_v2 = vld [vmem:[%s267_s16] sm:$0xff]  ;;  %v320_v3 = vsel %vm307_vm0, %v1082_v0, 0.0  ;;  %v314_v4 = vsel %vm307_vm0, %v1084_v1, 0.0  ;;  %v1094_v6 = vld [vmem:[%s267_s16 + $0x28] sm:$0xff]  ;;  %v1096_v7 = vld [vmem:[%s267_s16 + $0x18] sm:$0xff]  ;;  %vm411_vm3 = vcmask 1043459  }
  0x2b   : > { %v308_v5 = vsel %vm307_vm0, %v1086_v2, 0.0  ;;  %v1098_v8 = vld [vmem:[%s267_s16 + $0x8] sm:$0xff]  ;;  %321 = vadd.xlane.f32.xlu2 %v320_v3  ;;  %315 = vadd.xlane.f32.xlu1 %v314_v4  ;;  %v323_v9 = vsel %vm307_vm0, %v1094_v6, 0.0  ;;  %v317_v10 = vsel %vm307_vm0, %v1096_v7, 0.0  ;;  %v1106_v15 = vld [vmem:[%s267_s16 + $0x38] sm:$0xff]  ;;  %v1108_v16 = vld [vmem:[%s267_s16 + $0x30] sm:$0xff] }
  0x2c   : > { %v311_v11 = vsel %vm307_vm0, %v1098_v8, 0.0  ;;  %309 = vadd.xlane.f32.xlu0 %v308_v5  ;;  %v354_v12 = vadd.f32 %v323_v9, %v320_v3  ;;  %v347_v13 = vadd.f32 %v317_v10, %v314_v4  ;;  %v329_v17 = vsel %vm307_vm0, %v1106_v15, 0.0  ;;  %v372_v51 = vld [vmem:[%s1207_s1] sm:$0xff]  ;;  %s1147_s16 = scalar_lea.vmem [#allocation5], %s758_s10  ;;  %s774_s10 = sshll.u32 %s1007_s28, 6 }
  0x2d   : > { %v340_v14 = vadd.f32 %v311_v11, %v308_v5  ;;  %v326_v18 = vsel %vm307_vm0, %v1108_v16, 0.0  ;;  %vm417_vm4 = vcmask 1043456   ;;  %vm413_vm5 = vcmask 31744   ;;  %v373_v52 = vld [vmem:[%s1208_s2] sm:$0xff]  ;;  %s674_s23 = scalar_lea.hbm %s1213_s7, %s774_s10  ;;  %s675_s29 = sshll.u32 %s1147_s16, 4  ;;  %s676_s29 = int_to_ptr.vmem [resolvable:$true] %s675_s29 }
  0x2e   : > { %v348_v19 = vrot.slane %v347_v13, 4  ;;  %v355_v21 = vrot.slane %v354_v12, 4  ;;  %v361_v24 = vadd.f32 %v329_v17, %v326_v18  ;;  %v943_v53 = vmov 0   ;;  %s677_s8 = sshll.u32 %s674_s23, 4  ;;  %s663_s28 = scalar_lea.sflag [#allocation4], %s1072_s22  ;;  %s678_s8 = int_to_ptr.hbm [resolvable:$true] %s677_s8 }
  0x2f   : > { %v341_v20 = vrot.slane %v340_v14, 4  ;;  %826 = vset.pattern.permute.xlu2 %v943_v53  ;;  %827 = vset.pattern.permute.xlu0 %v943_v53  ;;  %v392_v58 = vand.u32 127, %v391_v57  ;;  %vm396_vm6 = vcmask 130112   ;;  %vm450_vm7 = vcmask 64512   ;;  %s887_s17 = sshra.s32 %s678_s8, 4  ;;  %s893_s15 = scalar_lea.hbm %s1213_s7, 128  ;;  %s888_s17 = int_to_ptr.hbm [resolvable:$true] %s887_s17 }
  0x30   : > { %v349_v22 = vadd.f32 %v348_v19, %v347_v13  ;;  %v356_v25 = vadd.f32 %v355_v21, %v354_v12  ;;  %v362_v28 = vrot.slane %v361_v24, 4  ;;  %828 = vset.pattern.permute.xlu1 %v943_v53  ;;  %s889_s11 = scalar_lea.hbm %s888_s17, 64  ;;  %p894_p0 = scmp.lt.s32.totalorder %s888_s17, %s1213_s7 }
  0x31   : > { %v342_v23 = vadd.f32 %v341_v20, %v340_v14  ;;  %v394_v59 = vadd.s32 4294967288, %v392_v58  ;;  %p890_p6 = scmp.ne.s32.totalorder %s888_s17, %s889_s11  ;;  %p895_p1 = scmp.lt.s32.totalorder %s893_s15, %s889_s11 }
  0x32   : > { %v350_v26 = vrot.slane %v349_v22, 2  ;;  %v357_v29 = vrot.slane %v356_v25, 2  ;;  %v363_v32 = vadd.f32 %v362_v28, %v361_v24 }
  0x33   : > { %324 = vadd.xlane.f32.xlu2 %v323_v9  ;;  %318 = vadd.xlane.f32.xlu1 %v317_v10  ;;  %v343_v27 = vrot.slane %v342_v23, 2  ;;  %p891_p9 = pnand %p890_p6, %p1036_p11  ;;  %p896_p3 = por %p895_p1, %p894_p0 }
  0x34   : > { %312 = vadd.xlane.f32.xlu0 %v311_v11  ;;  %v351_v30 = vadd.f32 %v350_v26, %v349_v22  ;;  %v358_v33 = vadd.f32 %v357_v29, %v356_v25  ;;  %v364_v36 = vrot.slane %v363_v32, 2 }
  0x35   : > { %v344_v31 = vadd.f32 %v343_v27, %v342_v23  ;;  %p892_p13 = pneg %p891_p9 }
  0x36   : > { %v352_v34 = vrot.slane %v351_v30, 1  ;;  %v359_v37 = vrot.slane %v358_v33, 1  ;;  %v365_v40 = vadd.f32 %v364_v36, %v363_v32 }
  0x37   : > { %v345_v35 = vrot.slane %v344_v31, 1  ;;  %p897_p4 = pnand %p896_p3, %p892_p13 }
  0x38   : > { %v353_v38 = vadd.f32 %v352_v34, %v351_v30  ;;  %v360_v41 = vadd.f32 %v359_v37, %v358_v33  ;;  %v366_v44 = vrot.slane %v365_v40, 1 }
  0x39   : > { %v346_v39 = vadd.f32 %v345_v35, %v344_v31 }
  0x3a   : > { %v369_v42 = vmul.f32 0.0625, %v353_v38  ;;  %v367_v45 = vadd.f32 %v366_v44, %v365_v40  ;;  %v370_v46 = vmul.f32 0.0625, %v360_v41  ;;  %v375_v40 = vld [vmem:[%s1210_s4] sm:$0xf] }
  0x3b   : > { %330 = vadd.xlane.f32.xlu1 %v329_v17  ;;  %v368_v43 = vmul.f32 0.0625, %v346_v39  ;;  %v376_v41 = vld [vmem:[%s1211_s5] sm:$0xf] }
  0x3c   : > { %327 = vadd.xlane.f32.xlu0 %v326_v18  ;;  %v371_v47 = vmul.f32 0.0625, %v367_v45 }
  0x3d   : > { %v497_v48 = vsel %vm407_vm1, %v369_v42, %v368_v43  ;;  %v377_v42 = vld [vmem:[%s1212_s6] sm:$0xf] }
  0x3e   : > { %v498_v49 = vsel %vm409_vm2, %v370_v46, %v497_v48 }
  0x3f   : > { %v499_v50 = vsel %vm411_vm3, %v371_v47, %v498_v49 }
  0x40   : > { %764 = vmatpush.msk.msra.mxu2 %vm417_vm4, %v499_v50  ;;  %v374_v50 = vld [vmem:[%s1209_s3] sm:$0xf] }
  0x41   : > { %765 = vmatmul.msk.f32.vlgmr.msra.gmra.mxu2 %vm413_vm5, %v372_v51 }
  0x4b   : > { %380 = vperm.xlu2 %826, %v373_v52  }
  0x50   : > { %447 = vperm.xlu0 %827, %v375_v40  }
  0x54   : > { %529 = vperm.xlu1 %828, %v377_v42  }
  0x9e   : > { %v322_v54 = vpop.xlane.xlu2 %321  ;;  %v316_v55 = vpop.xlane.xlu1 %315 }
  0x9f   : > { %v310_v56 = vpop.xlane.xlu0 %309  ;;  %v334_v3 = vmul.f32 0.0625, %v316_v55  ;;  %v336_v9 = vmul.f32 0.0625, %v322_v54 }
  0xa0   : > { %v332_v4 = vmul.f32 0.0625, %v310_v56 }
  0xa1   : > { %v398_v13 = vperm.slane %v334_v3, %v392_v58  ;;  %v401_v17 = vperm.slane %v336_v9, %v392_v58 }
  0xa2   : > { %v393_v14 = vperm.slane %v332_v4, %v392_v58 }
  0xa6   : > { %v325_v60 = vpop.xlane.xlu2 %324  ;;  %v319_v61 = vpop.xlane.xlu1 %318 }
  0xa7   : > { %v335_v62 = vmul.f32 0.0625, %v319_v61  ;;  %v313_v63 = vpop.xlane.xlu0 %312  ;;  %v337_v10 = vmul.f32 0.0625, %v325_v60 }
  0xa8   : > { %v333_v5 = vmul.f32 0.0625, %v313_v63 }
  0xa9   : > { %v399_v11 = vperm.slane %v335_v62, %v394_v59  ;;  %v402_v18 = vperm.slane %v337_v10, %v394_v59 }
  0xaa   : > { %v395_v12 = vperm.slane %v333_v5, %v394_v59 }
  0xab   : > { %v400_v21 = vsel %vm396_vm6, %v399_v11, %v398_v13  ;;  %v403_v26 = vsel %vm396_vm6, %v402_v18, %v401_v17 }
  0xac   : > { %v397_v20 = vsel %vm396_vm6, %v395_v12, %v393_v14 }
  0xad   : > { %v408_v27 = vsel %vm407_vm1, %v400_v21, %v397_v20 }
  0xae   : > { %v331_v19 = vpop.xlane.xlu1 %330  ;;  %v410_v30 = vsel %vm409_vm2, %v403_v26, %v408_v27  ;;  %v381_v32 = vpop.permute.xlu2 %380 }
  0xaf   : > { %v339_v22 = vmul.f32 0.0625, %v331_v19  ;;  %v328_v23 = vpop.xlane.xlu0 %327 }
  0xb0   : > { %v338_v24 = vmul.f32 0.0625, %v328_v23 }
  0xb1   : > { %v405_v25 = vperm.slane %v339_v22, %v394_v59 }
  0xb2   : > { %v404_v28 = vperm.slane %v338_v24, %v392_v58 }
  0xb4   : > { %v406_v29 = vsel %vm396_vm6, %v405_v25, %v404_v28 }
  0xb5   : > { %v412_v31 = vsel %vm411_vm3, %v406_v29, %v410_v30 }
  0xb6   : > { %760 = vmatpush.msk.msra.mxu0 %vm417_vm4, %v412_v31 }
  0xb7   : > { %761 = vmatmul.msk.f32.vlgmr.msra.gmra.mxu0 %vm413_vm5, %v372_v51  ;;  %v576_v51 = vshrl.u32 %v391_v57, 7 }
  0xb9   : > { %829 = vset.pattern.permute.xlu2 %v576_v51  ;;  %831 = vset.pattern.permute.xlu1 %v576_v51  ;;  %v583_v52 = vadd.s32 8, %v576_v51 }
  0xbb   : > { %832 = vset.pattern.permute.xlu0 %v583_v52 }
  0xc2   : > { %v448_v53 = vpop.permute.xlu0 %447 }
  0xc4   : > { %v519_v33 = vpop.f32.mrf.mxu2 }
  0xc5   : > { %v520_v34 = vadd.f32 %v519_v33, %v381_v32 }
  0xc6   : > { %v530_v17 = vpop.permute.xlu1 %529 }
  0xc7   : > { %v522_v35 = vadd.f32 3.0, %v520_v34 }
  0xc9   : > { %v523_v36 = vmax.f32 %v522_v35, 0.0 }
  0xcb   : > { %v524_v37 = vmin.f32 %v523_v36, 6.0 }
  0xcd   : > { %v525_v38 = vmul.f32 %v524_v37, %v520_v34 }
  0xcf   : > { %v526_v39 = vmul.f32 0.16666667, %v525_v38 }
  0xd1   : > { %550 = vmatpush.msra.mxu3 %v526_v39 }
  0xd2   : > { %766 = vmatmul.msk.f32.vlgmr.msra.gmra.mxu3 %vm450_vm7, %v376_v41 }
 0x134   : > { %v437_v43 = vpop.f32.mrf.mxu0 }
 0x135   : > { %v438_v44 = vadd.f32 %v437_v43, %v381_v32 }
 0x137   : > { %v440_v45 = vadd.f32 3.0, %v438_v44 }
 0x139   : > { %v441_v46 = vmax.f32 %v440_v45, 0.0 }
 0x13b   : > { %v442_v47 = vmin.f32 %v441_v46, 6.0 }
 0x13d   : > { %v443_v48 = vmul.f32 %v442_v47, %v438_v44 }
 0x13f   : > { %v444_v49 = vmul.f32 0.16666667, %v443_v48 }
 0x141   : > { %469 = vmatpush.msra.mxu1 %v444_v49 }
 0x142   : > { %762 = vmatmul.msk.f32.vlgmr.msra.gmra.mxu1 %vm450_vm7, %v374_v50 }
 0x155   : > { %v552_v18 = vpop.f32.mrf.mxu3 }
 0x156   : > { %v553_v19 = vadd.f32 %v552_v18, %v530_v17 }
 0x158   : > { %v767_v20 = vmul.f32 -1.442695, %v553_v19 }
 0x1bf   : > { %v471_v54 = vpop.f32.mrf.mxu1 }
 0x1c0   : > { %v472_v55 = vadd.f32 %v471_v54, %v448_v53 }
 0x1c2   : > { %v763_v56 = vmul.f32 -1.442695, %v472_v55 }
 0x1c4   : > { %835 = vpow2.f32 %v763_v56 }
 0x1ca   : > { %v836_v58 = vpop.eup %835 }
 0x1cb   : > { %v477_v59 = vadd.f32 1.0, %v836_v58 }
 0x1cd   : > { %837 = vrcp.f32 %v477_v59  ;;  %v489_v63 = vand.u32 2147483648, %v477_v59  ;;  %v487_v4 = vand.u32 2147483647, %v477_v59  ;;  %vm483_vm9 = vweird.f32 %v477_v59 }
 0x1ce   : > { %839 = vpow2.f32 %v767_v20 }
 0x1cf   : > { %v490_v5 = vor.u32 1.1754944e-38, %v489_v63  ;;  %vm488_vm11 = vcmp.eq.f32.partialorder %v487_v4, 8.507059e+37 }
 0x1d3   : > { %v838_v60 = vpop.eup %837 }
 0x1d4   : > { %v479_v61 = vmul.f32 %v838_v60, %v477_v59  ;;  %vm484_vm8 = vweird.f32 %v838_v60  ;;  %v840_v21 = vpop.eup %839 }
 0x1d5   : > { %vm485_vm10 = vmor %vm483_vm9, %vm484_vm8  ;;  %v558_v22 = vadd.f32 1.0, %v840_v21 }
 0x1d6   : > { %v480_v62 = vsub.f32 1.0, %v479_v61 }
 0x1d7   : > { %841 = vrcp.f32 %v558_v22  ;;  %vm564_vm12 = vweird.f32 %v558_v22  ;;  %v570_v27 = vand.u32 2147483648, %v558_v22  ;;  %v568_v29 = vand.u32 2147483647, %v558_v22 }
 0x1d8   : > { %v481_v3 = vmul.f32 %v838_v60, %v480_v62 }
 0x1d9   : > { %v571_v30 = vor.u32 1.1754944e-38, %v570_v27  ;;  %vm569_vm15 = vcmp.eq.f32.partialorder %v568_v29, 8.507059e+37 }
 0x1da   : > { %v482_v57 = vadd.f32 %v838_v60, %v481_v3 }
 0x1dc   : > { %v486_v9 = vsel %vm485_vm10, %v838_v60, %v482_v57 }
 0x1dd   : > { %v491_v10 = vsel %vm488_vm11, %v490_v5, %v486_v9  ;;  %v842_v23 = vpop.eup %841 }
 0x1de   : > { %v600_v11 = vperm.slane %v491_v10, 2  ;;  %v587_v12 = vperm.slane %v491_v10, 1  ;;  %v574_v13 = vperm.slane %v491_v10, 0  ;;  %v613_v14 = vperm.slane %v491_v10, 3 }
 0x1df   : > { %v560_v24 = vmul.f32 %v842_v23, %v558_v22  ;;  %vm565_vm13 = vweird.f32 %v842_v23 }
 0x1e0   : > { %611 = vperm.xlu0 %832, %v600_v11   ;;  %592 = vperm.xlu1 %831, %v587_v12   ;;  %vm566_vm14 = vmor %vm564_vm12, %vm565_vm13 }
 0x1e1   : > { %579 = vperm.xlu2 %829, %v574_v13   ;;  %v561_v25 = vsub.f32 1.0, %v560_v24 }
 0x1e3   : > { %v562_v26 = vmul.f32 %v842_v23, %v561_v25 }
 0x1e5   : > { %v563_v28 = vadd.f32 %v842_v23, %v562_v26 }
 0x1e7   : > { %v567_v31 = vsel %vm566_vm14, %v842_v23, %v563_v28 }
 0x1e8   : > { %605 = vperm.xlu1 %831, %v600_v11   ;;  %v572_v32 = vsel %vm569_vm15, %v571_v30, %v567_v31 }
 0x1e9   : > { %830 = vset.pattern.permute.xlu2 %v583_v52  ;;  %v638_v33 = vperm.slane %v572_v32, 0  ;;  %v628_v39 = vrot.slane %v572_v32, 2  ;;  %v627_v40 = vrot.slane %v572_v32, 1 }
 0x1eb   : > { %v639_v42 = vperm.slane %v627_v40, 0 }
 0x1f0   : > { %834 = vset.pattern.permute.xlu1 %v583_v52 }
 0x1f1   : > { %585 = vperm.xlu2 %830, %v574_v13  }
 0x1f8   : > { %624 = vperm.xlu1 %834, %v613_v14  }
 0x1f9   : > { %598 = vperm.xlu2 %830, %v587_v12  }
 0x201   : > { %833 = vset.pattern.permute.xlu2 %v576_v51 }
 0x209   : > { %618 = vperm.xlu2 %833, %v613_v14  }
 0x23b   : > { %v580_v34 = vpop.permute.xlu2 %579 }
 0x23c   : > { %v630_v35 = vmul.f32 %v580_v34, %v1086_v2  ;;  %v640_v2 = vperm.slane %v628_v39, 0 }
 0x23e   : > { %v646_v36 = vmul.f32 %v638_v33, %v630_v35 }
 0x240   : > { %654 = vst.msk [vmem:[%s1147_s16] sm:$0xff] %vm307_vm0, %v646_v36 }
 0x24b   : > { %v586_v37 = vpop.permute.xlu2 %585 }
 0x24c   : > { %v631_v38 = vmul.f32 %v586_v37, %v1098_v8 }
 0x24e   : > { %v647_v41 = vmul.f32 %v638_v33, %v631_v38 }
 0x250   : > { %655 = vst.msk [vmem:[%s1147_s16 + $0x8] sm:$0xff] %vm307_vm0, %v647_v41 }
 0x252   : > { %v612_v43 = vpop.permute.xlu0 %611  ;;  %v593_v44 = vpop.permute.xlu1 %592 }
 0x253   : > { %v635_v45 = vmul.f32 %v612_v43, %v1094_v6  ;;  %v632_v46 = vmul.f32 %v593_v44, %v1084_v1  ;;  %v599_v47 = vpop.permute.xlu2 %598  ;;  %v629_v1 = vrot.slane %v572_v32, 3 }
 0x254   : > { %v633_v8 = vmul.f32 %v599_v47, %v1096_v7 }
 0x255   : > { %v651_v48 = vmul.f32 %v640_v2, %v635_v45  ;;  %v648_v49 = vmul.f32 %v639_v42, %v632_v46  ;;  %v641_v54 = vperm.slane %v629_v1, 0 }
 0x256   : > { %v649_v50 = vmul.f32 %v639_v42, %v633_v8 }
 0x257   : > { %659 = vst.msk [vmem:[%s1147_s16 + $0x28] sm:$0xff] %vm307_vm0, %v651_v48 }
 0x258   : > { %656 = vst.msk [vmem:[%s1147_s16 + $0x10] sm:$0xff] %vm307_vm0, %v648_v49 }
 0x259   : > { %657 = vst.msk [vmem:[%s1147_s16 + $0x18] sm:$0xff] %vm307_vm0, %v649_v50 }
 0x25a   : > { %v606_v51 = vpop.permute.xlu1 %605 }
 0x25b   : > { %v634_v6 = vmul.f32 %v606_v51, %v1082_v0 }
 0x25d   : > { %v650_v52 = vmul.f32 %v640_v2, %v634_v6 }
 0x25f   : > { %658 = vst.msk [vmem:[%s1147_s16 + $0x20] sm:$0xff] %vm307_vm0, %v650_v52 }
 0x263   : > { %v619_v7 = vpop.permute.xlu2 %618 }
 0x264   : > { %v636_v53 = vmul.f32 %v619_v7, %v1108_v16 }
 0x266   : > { %v652_v55 = vmul.f32 %v641_v54, %v636_v53 }
 0x268   : > { %660 = vst.msk [vmem:[%s1147_s16 + $0x30] sm:$0xff] %vm307_vm0, %v652_v55 }
 0x26a   : > { %v625_v0 = vpop.permute.xlu1 %624 }
 0x26b   : > { %v637_v56 = vmul.f32 %v625_v0, %v1106_v15 }
 0x26d   : > { %v653_v58 = vmul.f32 %v641_v54, %v637_v56 }
 0x26f   : > { %661 = vst.msk [vmem:[%s1147_s16 + $0x38] sm:$0xff] %vm307_vm0, %v653_v58 }
 0x270   : > { %900 = shalt.err (!%p897_p4)
}
 0x271   : > { %s944_s22 = smov 128   ;;  %s945_s16 = smov 8  }
 0x272   : > { %777 = dma.vmem_to_hbm [thread:$0]  (%p1036_p11), %s676_s29, 1024, %s678_s8, %s663_s28, %s944_s22, %s944_s22, %s945_s16  }
 0x273 PF: > { %s692_s10 = sand.u32 1, %s927_s24   ;;  %p1220_p7 = scmp.ge.s32.totalorder %s939_s27, 2 }
 0x274   : > { %s693_s12 = scalar_lea.sflag [#allocation4], %s692_s10 }
 0x275   : > { %p784_p5 = pnand %p1220_p7, %p1040_p12 }
 0x277   : > { %p785_p8 = pneg %p784_p5 }
 0x279   : > { %922 = dma.done.wait (%p785_p8), %s693_s12, 1024  }
 0x27a   : > { %924 = vsyncadd (%p785_p8), %s693_s12, 4294966272  ;;  %s1221_s21 = sld [smem:[#allocation8_spill]]  ;;  %p20_p10 = scmp.ge.s32.totalorder %s1011_s30, 4  }
 0x27b   : > { %s1222_s24 = smov %s931_s25  ;;  %s1223_s25 = smov %s935_s26 }
 0x27c   : > { %s1225_s27 = smov %s1011_s30  ;;  %22 = sbr.rel (!%p20_p10) target bundleno = 5 (0x5), region = 93 }
 0x280   : > { %s1224_s26 = smov %s1221_s21 }
 0x281   :  { %699 = vsyncpa [#allocation3], 1 }
 0x282   :  { %701 = vsyncpa [#allocation3 + $0x1], 1 }
 0x283   :  { %702 = vsyncpa [#allocation4], 1 }
 0x284   :  { %704 = vsyncpa [#allocation4 + $0x1], 1 }

</bundles_post_ra>
